<compile_context>
chip_gen: v5e
topology: v5e:2x2
jax: 0.10.0
libtpu: 0.0.40
codegen_flags: <defaults>
</compile_context>

<pallas_src>
import math

import jax
import jax.numpy as jnp
from jax.experimental import pallas as pl
from jax.experimental.pallas import tpu as pltpu  # noqa: F401 (kept for TPU-specific tuning hooks)

LANE = 128  # lane-tile width; all post-encoder sections are padded to this


# ----------------------------------------------------------------------------
# Pallas kernel: one invocation, all B batches folded into the matmul M dim.
# ----------------------------------------------------------------------------
def _dit_kernel(xpk_ref, noise_ref, scales_ref,
                w_enc_ref, w_qkv_ref, w_head_ref, bias_ref,
                o_ref):
    f32 = jnp.float32
    B, S, Din = xpk_ref.shape
    E = w_enc_ref.shape[1]

    # --- fused block-diagonal encoders (weights + biases in one MXU pass) ---
    x = jnp.dot(xpk_ref[...].reshape(B * S, Din), w_enc_ref[...],
                preferred_element_type=f32)                      # (B*S, E)

    # bias slab layout: [qkv 0:3L | out-proj 3L:4L | classifier 4L:5L]
    b_qkv = bias_ref[:, 0:3 * LANE]
    b_o = bias_ref[:, 3 * LANE:4 * LANE]
    b_fc = bias_ref[:, 4 * LANE:5 * LANE]

    # --- fused QKV, each section lane-padded to 128 (tile-aligned slices) ---
    qkv = jnp.dot(x, w_qkv_ref[...], preferred_element_type=f32) + b_qkv
    q = qkv[:, 0:LANE].reshape(B, S, LANE)
    k = qkv[:, LANE:2 * LANE].reshape(B, S, LANE)
    v = qkv[:, 2 * LANE:3 * LANE].reshape(B, S, LANE)

    # --- single-head scaled-dot-product attention (zero pads are exact) -----
    s = jnp.einsum('bqd,bkd->bqk', q, k,
                   preferred_element_type=f32) * (1.0 / math.sqrt(E))
    s = s - jnp.max(s, axis=-1, keepdims=True)
    p = jnp.exp(s)
    # approx reciprocal runs on the EUP slot; flip to approx=False if exact
    # softmax-row-sum parity is ever asserted to tight tolerances.
    p = p * pl.reciprocal(jnp.sum(p, axis=-1, keepdims=True), approx=True)

    # mean over queries commutes with P @ V -> only pooled features computed
    p_mean = jnp.mean(p, axis=1, keepdims=True)                  # (B, 1, S)
    attn_mean = jnp.einsum('bqk,bkd->bqd', p_mean, v,
                           preferred_element_type=f32)           # (B, 1, LANE)
    attn_mean = attn_mean.reshape(B, LANE)

    # --- attention out-projection on pooled features -------------------------
    w_o = w_head_ref[:, 0:LANE]
    feat = jnp.dot(attn_mean, w_o, preferred_element_type=f32) + b_o  # (B, LANE)

    # --- DDPM forward diffusion, already pooled over the sequence ------------
    sab = scales_ref[:, 0:1]                                     # (B, 1)
    s1m = scales_ref[:, 1:2]                                     # (B, 1)
    feat = sab * feat + s1m * noise_ref[...]                     # (B, LANE)

    # --- classifier head (lane-padded; wrapper slices the 10 real classes) ---
    w_fc = w_head_ref[:, LANE:2 * LANE]
    o_ref[...] = jnp.dot(feat, w_fc, preferred_element_type=f32) + b_fc


# ----------------------------------------------------------------------------
# Wrapper
# ----------------------------------------------------------------------------
def diffusion_transformer_forward(x_spec, x_temp, x_spat, t, params, noise):
    f32 = jnp.float32
    B, S1, D1 = x_spec.shape
    _, S2, D2 = x_temp.shape
    _, S3, D3 = x_spat.shape
    S = S1 + S2 + S3
    D = D1 + D2 + D3
    Din = D + 3                       # + three segment "ones" columns (biases)
    E = params["w_spec"].shape[1]
    NC = params["w_fc"].shape[1]

    def pad_lanes(a, width=LANE):
        return jnp.zeros(a.shape[:-1] + (width,), f32).at[..., :a.shape[-1]].set(a)

    # ---- block-diagonal encoder input packing (wrapper glue) ----------------
    x_packed = jnp.zeros((B, S, Din), f32)
    x_packed = x_packed.at[:, :S1, :D1].set(x_spec.astype(f32))
    x_packed = x_packed.at[:, S1:S1 + S2, D1:D1 + D2].set(x_temp.astype(f32))
    x_packed = x_packed.at[:, S1 + S2:, D1 + D2:D].set(x_spat.astype(f32))
    x_packed = x_packed.at[:, :S1, D].set(1.0)           # spectral bias column
    x_packed = x_packed.at[:, S1:S1 + S2, D + 1].set(1.0)  # temporal bias column
    x_packed = x_packed.at[:, S1 + S2:, D + 2].set(1.0)    # spatial bias column

    # ---- parameter packing (tiny, hoisted out of the kernel) ----------------
    w_enc = jnp.concatenate([
        params["w_spec"], params["w_temp"], params["w_spat"],
        params["b_spec"], params["b_temp"], params["b_spat"]], axis=0)  # (Din, E)

    w_qkv = jnp.concatenate([pad_lanes(params["w_q"]),
                             pad_lanes(params["w_k"]),
                             pad_lanes(params["w_v"])], axis=1)         # (E, 3*LANE)

    w_head = jnp.concatenate([
        jnp.zeros((LANE, LANE), f32).at[:E, :E].set(params["w_o"]),
        jnp.zeros((LANE, LANE), f32).at[:E, :NC].set(params["w_fc"])],
        axis=1)                                                         # (LANE, 2*LANE)

    bias_slab = jnp.concatenate([
        pad_lanes(params["b_q"]), pad_lanes(params["b_k"]),
        pad_lanes(params["b_v"]), pad_lanes(params["b_o"]),
        pad_lanes(params["b_fc"])], axis=1)                             # (1, 5*LANE)

    # ---- diffusion schedule lookup + pooled noise (mean hoisted) ------------
    sqrt_ab = jnp.sqrt(params["alpha_bar"])[t]                          # (B,)
    sqrt_1mab = jnp.sqrt(1.0 - params["alpha_bar"])[t]                  # (B,)
    scales = jnp.stack([sqrt_ab, sqrt_1mab], axis=-1)                   # (B, 2)
    noise_mean = pad_lanes(jnp.mean(noise.astype(f32), axis=1))         # (B, LANE)

    out = pl.pallas_call(
        _dit_kernel,
        out_shape=jax.ShapeDtypeStruct((B, LANE), f32),
    )(x_packed, noise_mean, scales, w_enc, w_qkv, w_head, bias_slab)
    return out[:, :NC]


# ----------------------------------------------------------------------------
# Deterministic parameter init (torch.nn.Linear-style uniform fan-in init)
# ----------------------------------------------------------------------------
def init_params(key, d_spec, d_temp, d_spat, embed_dim, timesteps,
                num_classes=10):
    def linear(k, fan_in, fan_out):
        bound = 1.0 / jnp.sqrt(jnp.float32(fan_in))
        kw, kb = jax.random.split(k)
        w = jax.random.uniform(kw, (fan_in, fan_out), jnp.float32, -bound, bound)
        b = jax.random.uniform(kb, (1, fan_out), jnp.float32, -bound, bound)
        return w, b

    keys = jax.random.split(key, 9)
    p = {}
    p["w_spec"], p["b_spec"] = linear(keys[0], d_spec, embed_dim)
    p["w_temp"], p["b_temp"] = linear(keys[1], d_temp, embed_dim)
    p["w_spat"], p["b_spat"] = linear(keys[2], d_spat, embed_dim)
    p["w_q"], p["b_q"] = linear(keys[3], embed_dim, embed_dim)
    p["w_k"], p["b_k"] = linear(keys[4], embed_dim, embed_dim)
    p["w_v"], p["b_v"] = linear(keys[5], embed_dim, embed_dim)
    p["w_o"], p["b_o"] = linear(keys[6], embed_dim, embed_dim)
    p["w_fc"], p["b_fc"] = linear(keys[7], embed_dim, num_classes)

    betas = jnp.linspace(1e-4, 0.02, timesteps, dtype=jnp.float32)
    p["alpha_bar"] = jnp.cumprod(1.0 - betas)
    return p


if __name__ == "__main__":
    # small shapes consistent with the forward pass
    B = 2
    SEQ = 8                         # tokens per modality
    D_SPEC, D_TEMP, D_SPAT = 16, 12, 20
    EMBED = 32
    TIMESTEPS = 10

    key = jax.random.PRNGKey(0)
    k_p, k_s, k_t, k_sp, k_time, k_noise = jax.random.split(key, 6)

    params = init_params(k_p, D_SPEC, D_TEMP, D_SPAT, EMBED, TIMESTEPS)

    x_spectral = jax.random.normal(k_s, (B, SEQ, D_SPEC), jnp.float32)
    x_temporal = jax.random.normal(k_t, (B, SEQ, D_TEMP), jnp.float32)
    x_spatial = jax.random.normal(k_sp, (B, SEQ, D_SPAT), jnp.float32)
    t = jax.random.randint(k_time, (B,), 0, TIMESTEPS)

    # torch.randn-equivalent noise for forward_diffusion, sampled host-side
    noise = jax.random.normal(k_noise, (B, 3 * SEQ, EMBED), jnp.float32)

    fwd = jax.jit(diffusion_transformer_forward)
    out = fwd(x_spectral, x_temporal, x_spatial, t, params, noise)
    jax.block_until_ready(out)

    assert out.shape == (B, 10), out.shape
    assert jnp.all(jnp.isfinite(out))
    print("KERNEL_OK")
</pallas_src>

<mosaic_0001>
module attributes {stable_mosaic.version = 11 : i64} {
  func.func @_dit_kernel(%arg0: memref<2x24x51xf32, #tpu.memory_space<vmem>>, %arg1: memref<2x128xf32, #tpu.memory_space<vmem>>, %arg2: memref<2x2xf32, #tpu.memory_space<vmem>>, %arg3: memref<51x32xf32, #tpu.memory_space<vmem>>, %arg4: memref<32x384xf32, #tpu.memory_space<vmem>>, %arg5: memref<128x256xf32, #tpu.memory_space<vmem>>, %arg6: memref<1x640xf32, #tpu.memory_space<vmem>>, %arg7: memref<2x128xf32, #tpu.memory_space<vmem>>) attributes {dimension_semantics = [], scalar_prefetch = 0 : i64, scratch_operands = 0 : i64, tpu.core_type = #tpu.core_type<tc>} {
    %c0 = arith.constant 0 : index
    %c0_0 = arith.constant 0 : index
    %c0_1 = arith.constant 0 : index
    %0 = vector.load %arg0[%c0, %c0_0, %c0_1] : memref<2x24x51xf32, #tpu.memory_space<vmem>>, vector<2x24x51xf32>
    %1 = vector.shape_cast %0 : vector<2x24x51xf32> to vector<48x51xf32>
    %c0_2 = arith.constant 0 : index
    %c0_3 = arith.constant 0 : index
    %2 = vector.load %arg3[%c0_2, %c0_3] : memref<51x32xf32, #tpu.memory_space<vmem>>, vector<51x32xf32>
    %cst = arith.constant dense<0.000000e+00> : vector<48x32xf32>
    %3 = tpu.matmul %1, %2, %cst {dimension_numbers = #tpu.dot_dimension_numbers<[1], [0], [0], [1], [0, 0, 1, 1], [], []>} : vector<48x51xf32>, vector<51x32xf32>, vector<48x32xf32> -> vector<48x32xf32>
    %c0_4 = arith.constant 0 : index
    %c0_5 = arith.constant 0 : index
    %4 = vector.load %arg6[%c0_4, %c0_5] : memref<1x640xf32, #tpu.memory_space<vmem>>, vector<1x384xf32>
    %c0_6 = arith.constant 0 : index
    %c384 = arith.constant 384 : index
    %5 = vector.load %arg6[%c0_6, %c384] : memref<1x640xf32, #tpu.memory_space<vmem>>, vector<1x128xf32>
    %c0_7 = arith.constant 0 : index
    %c512 = arith.constant 512 : index
    %6 = vector.load %arg6[%c0_7, %c512] : memref<1x640xf32, #tpu.memory_space<vmem>>, vector<1x128xf32>
    %c0_8 = arith.constant 0 : index
    %c0_9 = arith.constant 0 : index
    %7 = vector.load %arg4[%c0_8, %c0_9] : memref<32x384xf32, #tpu.memory_space<vmem>>, vector<32x384xf32>
    %cst_10 = arith.constant dense<0.000000e+00> : vector<48x384xf32>
    %8 = tpu.matmul %3, %7, %cst_10 {dimension_numbers = #tpu.dot_dimension_numbers<[1], [0], [0], [1], [0, 0, 1, 1], [], []>} : vector<48x32xf32>, vector<32x384xf32>, vector<48x384xf32> -> vector<48x384xf32>
    %9 = vector.broadcast %4 : vector<1x384xf32> to vector<48x384xf32>
    %10 = arith.addf %8, %9 : vector<48x384xf32>
    %11 = vector.extract_strided_slice %10 {offsets = [0, 0], sizes = [48, 128], strides = [1, 1]} : vector<48x384xf32> to vector<48x128xf32>
    %12 = vector.shape_cast %11 : vector<48x128xf32> to vector<2x24x128xf32>
    %13 = vector.extract_strided_slice %10 {offsets = [0, 128], sizes = [48, 128], strides = [1, 1]} : vector<48x384xf32> to vector<48x128xf32>
    %14 = vector.shape_cast %13 : vector<48x128xf32> to vector<2x24x128xf32>
    %15 = vector.extract_strided_slice %10 {offsets = [0, 256], sizes = [48, 128], strides = [1, 1]} : vector<48x384xf32> to vector<48x128xf32>
    %16 = vector.shape_cast %15 : vector<48x128xf32> to vector<2x24x128xf32>
    "tpu.trace_start"() <{level = 10 : i32, message = "bqd,bkd->bqk"}> : () -> ()
    %cst_11 = arith.constant dense<0.000000e+00> : vector<2x24x24xf32>
    %17 = tpu.matmul %12, %14, %cst_11 {dimension_numbers = #tpu.dot_dimension_numbers<[2], [2], [1], [1], [0, 0, 0, 1, 1, 1], [0], [0]>} : vector<2x24x128xf32>, vector<2x24x128xf32>, vector<2x24x24xf32> -> vector<2x24x24xf32>
    "tpu.trace_stop"() : () -> ()
    %cst_12 = arith.constant 0.176776692 : f32
    %18 = vector.broadcast %cst_12 : f32 to vector<2x24x24xf32>
    %19 = arith.mulf %17, %18 : vector<2x24x24xf32>
    %cst_13 = arith.constant dense<0xFF800000> : vector<2x24xf32>
    %20 = vector.multi_reduction <maximumf>, %19, %cst_13 [2] : vector<2x24x24xf32> to vector<2x24xf32>
    %21 = vector.shape_cast %20 : vector<2x24xf32> to vector<2x24x1xf32>
    %22 = vector.broadcast %21 : vector<2x24x1xf32> to vector<2x24x24xf32>
    %23 = arith.subf %19, %22 : vector<2x24x24xf32>
    %24 = math.exp %23 : vector<2x24x24xf32>
    %cst_14 = arith.constant dense<0.000000e+00> : vector<2x24xf32>
    %25 = vector.multi_reduction <add>, %24, %cst_14 [2] : vector<2x24x24xf32> to vector<2x24xf32>
    %26 = vector.shape_cast %25 : vector<2x24xf32> to vector<2x24x1xf32>
    %27 = tpu.reciprocal %26 {approx = true} : vector<2x24x1xf32> -> vector<2x24x1xf32>
    %28 = vector.broadcast %27 : vector<2x24x1xf32> to vector<2x24x24xf32>
    %29 = arith.mulf %24, %28 : vector<2x24x24xf32>
    %cst_15 = arith.constant dense<0.000000e+00> : vector<2x24xf32>
    %30 = vector.multi_reduction <add>, %29, %cst_15 [1] : vector<2x24x24xf32> to vector<2x24xf32>
    %31 = vector.shape_cast %30 : vector<2x24xf32> to vector<2x1x24xf32>
    %cst_16 = arith.constant 2.400000e+01 : f32
    %32 = vector.broadcast %cst_16 : f32 to vector<2x1x24xf32>
    %33 = arith.divf %31, %32 : vector<2x1x24xf32>
    "tpu.trace_start"() <{level = 10 : i32, message = "bqk,bkd->bqd"}> : () -> ()
    %cst_17 = arith.constant dense<0.000000e+00> : vector<2x1x128xf32>
    %34 = tpu.matmul %33, %16, %cst_17 {dimension_numbers = #tpu.dot_dimension_numbers<[2], [1], [1], [2], [0, 0, 0, 1, 1, 2], [0], [0]>} : vector<2x1x24xf32>, vector<2x24x128xf32>, vector<2x1x128xf32> -> vector<2x1x128xf32>
    "tpu.trace_stop"() : () -> ()
    %35 = vector.shape_cast %34 : vector<2x1x128xf32> to vector<2x128xf32>
    %c0_18 = arith.constant 0 : index
    %c0_19 = arith.constant 0 : index
    %36 = vector.load %arg5[%c0_18, %c0_19] : memref<128x256xf32, #tpu.memory_space<vmem>>, vector<128x128xf32>
    %cst_20 = arith.constant dense<0.000000e+00> : vector<2x128xf32>
    %37 = tpu.matmul %35, %36, %cst_20 {dimension_numbers = #tpu.dot_dimension_numbers<[1], [0], [0], [1], [0, 0, 1, 1], [], []>} : vector<2x128xf32>, vector<128x128xf32>, vector<2x128xf32> -> vector<2x128xf32>
    %38 = vector.broadcast %5 : vector<1x128xf32> to vector<2x128xf32>
    %39 = arith.addf %37, %38 : vector<2x128xf32>
    %c0_21 = arith.constant 0 : index
    %c0_22 = arith.constant 0 : index
    %40 = vector.load %arg2[%c0_21, %c0_22] : memref<2x2xf32, #tpu.memory_space<vmem>>, vector<2x1xf32>
    %c0_23 = arith.constant 0 : index
    %c1 = arith.constant 1 : index
    %41 = vector.load %arg2[%c0_23, %c1] : memref<2x2xf32, #tpu.memory_space<vmem>>, vector<2x1xf32>
    %42 = vector.broadcast %40 : vector<2x1xf32> to vector<2x128xf32>
    %43 = arith.mulf %42, %39 : vector<2x128xf32>
    %c0_24 = arith.constant 0 : index
    %c0_25 = arith.constant 0 : index
    %44 = vector.load %arg1[%c0_24, %c0_25] : memref<2x128xf32, #tpu.memory_space<vmem>>, vector<2x128xf32>
    %45 = vector.broadcast %41 : vector<2x1xf32> to vector<2x128xf32>
    %46 = arith.mulf %45, %44 : vector<2x128xf32>
    %47 = arith.addf %43, %46 : vector<2x128xf32>
    %c0_26 = arith.constant 0 : index
    %c128 = arith.constant 128 : index
    %48 = vector.load %arg5[%c0_26, %c128] : memref<128x256xf32, #tpu.memory_space<vmem>>, vector<128x128xf32>
    %cst_27 = arith.constant dense<0.000000e+00> : vector<2x128xf32>
    %49 = tpu.matmul %47, %48, %cst_27 {dimension_numbers = #tpu.dot_dimension_numbers<[1], [0], [0], [1], [0, 0, 1, 1], [], []>} : vector<2x128xf32>, vector<128x128xf32>, vector<2x128xf32> -> vector<2x128xf32>
    %50 = vector.broadcast %6 : vector<1x128xf32> to vector<2x128xf32>
    %51 = arith.addf %49, %50 : vector<2x128xf32>
    %c0_28 = arith.constant 0 : index
    %c0_29 = arith.constant 0 : index
    %52 = vector.load %arg7[%c0_28, %c0_29] : memref<2x128xf32, #tpu.memory_space<vmem>>, vector<2x128xf32>
    tpu.vector_store %arg7[%c0_28, %c0_29], %51 {strides = array<i32>} : memref<2x128xf32, #tpu.memory_space<vmem>>, vector<2x128xf32>,
    return
  }
}

</mosaic_0001>

<bundles_post_ra>
// kernel: diffusion_transformer_forward.1
= control target key start
LH: loop header
LB: loop body
LE: loop exit
PB: predicated region body
PF: predicated region fallthrough
CT: control target
= control target key end

     0   :  { %vm59_vm0 = vcmask 1042432   ;;  %s934_s0 = inlined_call_operand.vmem [shape: f32[2,24,51], index: 0, kind: input, shape index: {}]   ;;  %s935_s1 = inlined_call_operand.vmem [shape: f32[2,128], index: 1, kind: input, shape index: {}]   ;;  %s936_s2 = inlined_call_operand.vmem [shape: f32[2,2], index: 2, kind: input, shape index: {}]   ;;  %s937_s3 = inlined_call_operand.vmem [shape: f32[51,32], index: 3, kind: input, shape index: {}]   ;;  %s938_s4 = inlined_call_operand.vmem [shape: f32[32,384], index: 4, kind: input, shape index: {}]   ;;  %s939_s5 = inlined_call_operand.vmem [shape: f32[128,256], index: 5, kind: input, shape index: {}]   ;;  %s940_s6 = inlined_call_operand.vmem [shape: f32[1,640], index: 6, kind: input, shape index: {}]   ;;  %s941_s7 = inlined_call_operand.hbm [shape: f32[2,128], index: 7, kind: output, shape index: {}]  }
   0x1   :  { %v39_v0 = vld [vmem:[%s937_s3 + $0x30] sm:$0x7]  ;;  %v38_v1 = vld [vmem:[%s937_s3 + $0x28] sm:$0xff]  ;;  %v37_v2 = vld [vmem:[%s937_s3 + $0x20] sm:$0xff] }
   0x2   :  { %561 = vmatpush.msk.msra.mxu0 %vm59_vm0, %v39_v0  ;;  %v36_v3 = vld [vmem:[%s937_s3 + $0x18] sm:$0xff] }
   0x4   :  { %73 = vmatpush.msra.mxu0 %v38_v1 }
   0x5   :  { %12 = vsyncpa [#allocation3], 0  ;;  %v35_v4 = vld [vmem:[%s937_s3 + $0x10] sm:$0xff]  ;;  %v34_v5 = vld [vmem:[%s937_s3 + $0x8] sm:$0xff]  ;;  %vm40_vm1 = vcmask 416768   ;;  %vm120_vm2 = vcmask 261120  }
   0x6   :  { %74 = vmatpush.msra.mxu0 %v37_v2  ;;  %v33_v6 = vld [vmem:[%s937_s3] sm:$0xff]  ;;  %v28_v8 = vld [vmem:[%s934_s0 + $0x8] sm:$0xff]  ;;  %v111_v10 = vld [vmem:[%s938_s4 + $0x50] sm:$0xff]  ;;  %vm302_vm3 = vcmask 195584   ;;  %vm468_vm5 = vcmask 1041409   ;;  %s552_s22 = sshll.u32 %s941_s7, 4  ;;  %s553_s22 = int_to_ptr.hbm [resolvable:$true] %s552_s22 }
   0x7   :  { %v27_v7 = vld [vmem:[%s934_s0] sm:$0xff]  ;;  %v110_v9 = vld [vmem:[%s938_s4 + $0x48] sm:$0xff]  ;;  %v107_v11 = vld [vmem:[%s938_s4 + $0x30] sm:$0xff]  ;;  %592 = vmatpush.msra.mxu2 %v111_v10 }
   0x8   :  { %75 = vmatpush.msra.mxu0 %v36_v3  ;;  %151 = vmatpush.msra.mxu1 %v110_v9  ;;  %v108_v12 = vld [vmem:[%s938_s4 + $0x38] sm:$0xff]  ;;  %v105_v14 = vld [vmem:[%s938_s4 + $0x20] sm:$0xff]  ;;  %v29_v15 = vld [vmem:[%s934_s0 + $0x10] sm:$0xff] }
   0x9   :  { %v104_v13 = vld [vmem:[%s938_s4 + $0x18] sm:$0xff]  ;;  %588 = vmatpush.msra.mxu3 %v110_v9  ;;  %593 = vmatpush.msra.mxu2 %v108_v12  ;;  %v31_v17 = vld [vmem:[%s934_s0 + $0x20] sm:$0xff]  ;;  %v32_v18 = vld [vmem:[%s934_s0 + $0x28] sm:$0xff] }
   0xa   :  { %76 = vmatpush.msra.mxu0 %v35_v4  ;;  %152 = vmatpush.msra.mxu1 %v107_v11  ;;  %v30_v16 = vld [vmem:[%s934_s0 + $0x18] sm:$0xff]  ;;  %v101_v19 = vld [vmem:[%s938_s4] sm:$0xff]  ;;  %v102_v20 = vld [vmem:[%s938_s4 + $0x8] sm:$0xff] }
   0xb   :  { %589 = vmatpush.msra.mxu3 %v107_v11  ;;  %594 = vmatpush.msra.mxu2 %v105_v14  ;;  %v112_v23 = vld [vmem:[%s938_s4 + $0x58] sm:$0xff]  ;;  %v109_v24 = vld [vmem:[%s938_s4 + $0x40] sm:$0xff]  ;;  %v106_v25 = vld [vmem:[%s938_s4 + $0x28] sm:$0xff] }
   0xc   :  { %77 = vmatpush.msra.mxu0 %v34_v5  ;;  %153 = vmatpush.msra.mxu1 %v104_v13  ;;  %v103_v26 = vld [vmem:[%s938_s4 + $0x10] sm:$0xff]  ;;  %v98_v32 = vld [vmem:[%s940_s6] sm:$0x7] }
   0xd   :  { %590 = vmatpush.msra.mxu3 %v104_v13  ;;  %595 = vmatpush.msra.mxu2 %v102_v20  ;;  %v115_v33 = vperm.slane %v98_v32, 1  ;;  %v114_v39 = vperm.slane %v98_v32, 0  ;;  %v116_v59 = vperm.slane %v98_v32, 2 }
   0xe   :  { %78 = vmatpush.msra.mxu0 %v33_v6  ;;  %154 = vmatpush.msra.mxu1 %v101_v19 }
   0xf   :  { %562 = vmatmul.msk.f32.vlgmr.msra.gmra.mxu0 %vm40_vm1, %v27_v7  ;;  %591 = vmatpush.msra.mxu3 %v101_v19 }
  0x10   :  { %186 = vmatpush.msrb.mxu0 %v111_v10 }
  0x11   :  { %221 = vmatpush.msrb.mxu3 %v112_v23 }
  0x12   :  { %187 = vmatpush.msrb.mxu0 %v108_v12 }
  0x13   :  { %222 = vmatpush.msrb.mxu3 %v109_v24 }
  0x14   :  { %188 = vmatpush.msrb.mxu0 %v105_v14 }
  0x15   :  { %223 = vmatpush.msrb.mxu3 %v106_v25 }
  0x16   :  { %189 = vmatpush.msrb.mxu0 %v102_v20 }
  0x17   :  { %563 = vmatmul.msk.f32.gmra.mxu0 %vm40_vm1, %v28_v8  ;;  %224 = vmatpush.msrb.mxu3 %v103_v26 }
  0x1f   :  { %564 = vmatmul.msk.f32.gmra.mxu0 %vm40_vm1, %v29_v15 }
  0x27   :  { %565 = vmatmul.msk.f32.gmra.mxu0 %vm40_vm1, %v30_v16 }
  0x2f   :  { %566 = vmatmul.msk.f32.gmra.mxu0 %vm40_vm1, %v31_v17 }
  0x37   :  { %567 = vmatmul.msk.f32.gmra.mxu0 %vm40_vm1, %v32_v18 }
  0x8c   :  { %v80_v21 = vpop.f32.mrf.mxu0 }
  0x8d   :  { %568 = vmatmul.msk.f32.vlgmr.msra.gmra.mxu1 %vm120_vm2, %v80_v21  ;;  %574 = vmatmul.msk.f32.vlgmr.msrb.gmra.mxu0 %vm120_vm2, %v80_v21 }
  0x94   :  { %v83_v22 = vpop.f32.mrf.mxu0 }
  0x95   :  { %569 = vmatmul.msk.f32.gmra.mxu1 %vm120_vm2, %v83_v22  ;;  %575 = vmatmul.msk.f32.vlgmr.msra.gmra.mxu2 %vm120_vm2, %v83_v22 }
  0x9c   :  { %v86_v27 = vpop.f32.mrf.mxu0 }
  0x9d   :  { %570 = vmatmul.msk.f32.gmra.mxu1 %vm120_vm2, %v86_v27  ;;  %576 = vmatmul.msk.f32.gmra.mxu2 %vm120_vm2, %v86_v27 }
  0xa4   :  { %v89_v28 = vpop.f32.mrf.mxu0 }
  0xa5   :  { %571 = vmatmul.msk.f32.gmra.mxu1 %vm120_vm2, %v89_v28  ;;  %577 = vmatmul.msk.f32.gmra.mxu2 %vm120_vm2, %v89_v28 }
  0xac   :  { %v92_v29 = vpop.f32.mrf.mxu0 }
  0xad   :  { %572 = vmatmul.msk.f32.gmra.mxu1 %vm120_vm2, %v92_v29  ;;  %578 = vmatmul.msk.f32.gmra.mxu2 %vm120_vm2, %v92_v29 }
  0xb4   :  { %v95_v30 = vpop.f32.mrf.mxu0 }
  0xb5   :  { %573 = vmatmul.msk.f32.vlgmr.msra.gmra.mxu3 %vm120_vm2, %v95_v30  ;;  %579 = vmatmul.msk.f32.gmra.mxu2 %vm120_vm2, %v95_v30 }
  0xbd   :  { %580 = vmatmul.msk.f32.vlgmr.msrb.gmra.mxu3 %vm120_vm2, %v80_v21 }
  0xc5   :  { %581 = vmatmul.msk.f32.gmra.mxu3 %vm120_vm2, %v83_v22 }
  0xcd   :  { %582 = vmatmul.msk.f32.gmra.mxu3 %vm120_vm2, %v86_v27 }
  0xd5   :  { %583 = vmatmul.msk.f32.gmra.mxu3 %vm120_vm2, %v89_v28 }
  0xdd   :  { %584 = vmatmul.msk.f32.gmra.mxu3 %vm120_vm2, %v92_v29 }
  0xe5   :  { %585 = vmatmul.msk.f32.gmra.mxu3 %vm120_vm2, %v95_v30 }
 0x10a   :  { %v156_v35 = vpop.f32.mrf.mxu1  ;;  %v191_v38 = vpop.f32.mrf.mxu0 }
 0x10b   :  { %v192_v41 = vadd.f32 %v191_v38, %v115_v33  ;;  %v157_v43 = vadd.f32 %v156_v35, %v114_v39 }
 0x112   :  { %v159_v42 = vpop.f32.mrf.mxu1 }
 0x113   :  { %v160_v45 = vadd.f32 %v159_v42, %v114_v39 }
 0x118   :  { %v194_v31 = vpop.f32.mrf.mxu2 }
 0x119   :  { %v195_v37 = vadd.f32 %v194_v31, %v115_v33 }
 0x11a   :  { %v162_v46 = vpop.f32.mrf.mxu1 }
 0x11b   :  { %v163_v50 = vadd.f32 %v162_v46, %v114_v39 }
 0x120   :  { %v197_v34 = vpop.f32.mrf.mxu2 }
 0x121   :  { %v198_v36 = vadd.f32 %v197_v34, %v115_v33 }
 0x122   :  { %v165_v52 = vpop.f32.mrf.mxu1 }
 0x123   :  { %257 = vmatpush.xpose.msrb.mxu1 %v198_v36  ;;  %v166_v55 = vadd.f32 %v165_v52, %v114_v39 }
 0x127   :  { %258 = vmatpush.xpose.msrb.mxu1 %v195_v37 }
 0x128   :  { %v200_v40 = vpop.f32.mrf.mxu2 }
 0x129   :  { %v201_v54 = vadd.f32 %v200_v40, %v115_v33 }
 0x12a   :  { %v168_v57 = vpop.f32.mrf.mxu1 }
 0x12b   :  { %259 = vmatpush.xpose.msrb.mxu1 %v192_v41  ;;  %v169_v58 = vadd.f32 %v168_v57, %v114_v39  ;;  %v657_v57 = vmov 24.0  }
 0x12e   :  { %260 = vmatmul.f32.vlgmr.msrb.gmra.mxu1 %v157_v43 }
 0x130   :  { %v203_v44 = vpop.f32.mrf.mxu2 }
 0x131   :  { %v204_v51 = vadd.f32 %v203_v44, %v115_v33 }
 0x136   :  { %263 = vmatmul.f32.gmra.mxu1 %v160_v45 }
 0x138   :  { %v171_v47 = vpop.f32.mrf.mxu3  ;;  %v206_v48 = vpop.f32.mrf.mxu2 }
 0x139   :  { %v207_v49 = vadd.f32 %v206_v48, %v115_v33  ;;  %v172_v63 = vadd.f32 %v171_v47, %v114_v39 }
 0x13b   :  { %283 = vmatpush.xpose.msrb.mxu2 %v207_v49 }
 0x13e   :  { %266 = vmatmul.f32.gmra.mxu1 %v163_v50 }
 0x13f   :  { %284 = vmatpush.xpose.msrb.mxu2 %v204_v51 }
 0x140   :  { %v226_v53 = vpop.f32.mrf.mxu3 }
 0x141   :  { %v227_v0 = vadd.f32 %v226_v53, %v116_v59 }
 0x143   :  { %285 = vmatpush.xpose.msrb.mxu2 %v201_v54 }
 0x146   :  { %286 = vmatmul.f32.vlgmr.msrb.gmra.mxu2 %v166_v55 }
 0x148   :  { %v229_v56 = vpop.f32.mrf.mxu3 }
 0x149   :  { %v230_v62 = vadd.f32 %v229_v56, %v116_v59 }
 0x14e   :  { %289 = vmatmul.f32.gmra.mxu2 %v169_v58 }
 0x150   :  { %v232_v60 = vpop.f32.mrf.mxu3 }
 0x151   :  { %v233_v61 = vadd.f32 %v232_v60, %v116_v59 }
 0x153   :  { %416 = vmatpush.msra.mxu3 %v233_v61 }
 0x155   :  { %417 = vmatpush.msra.mxu3 %v230_v62 }
 0x156   :  { %292 = vmatmul.f32.gmra.mxu2 %v172_v63 }
 0x157   :  { %418 = vmatpush.msra.mxu3 %v227_v0 }
 0x158   :  { %v235_v1 = vpop.f32.mrf.mxu3 }
 0x159   :  { %v236_v6 = vadd.f32 %v235_v1, %v116_v59 }
 0x160   :  { %v238_v2 = vpop.f32.mrf.mxu3 }
 0x161   :  { %v239_v5 = vadd.f32 %v238_v2, %v116_v59 }
 0x168   :  { %v241_v3 = vpop.f32.mrf.mxu3 }
 0x169   :  { %v242_v4 = vadd.f32 %v241_v3, %v116_v59 }
 0x16b   :  { %439 = vmatpush.msra.mxu0 %v242_v4 }
 0x16d   :  { %440 = vmatpush.msra.mxu0 %v239_v5 }
 0x16f   :  { %441 = vmatpush.msra.mxu0 %v236_v6 }
 0x1ab   :  { %v261_v7 = vpop.f32.mrf.mxu1 }
 0x1ac   :  { %v296_v8 = vmul.f32 0.17677669, %v261_v7 }
 0x1ae   :  { %v303_v9 = vsel %vm302_vm3, %v296_v8, -inf }
 0x1af   :  { %304 = vmax.xlane.f32.xlu0 %v303_v9 }
 0x1b3   :  { %v264_v10 = vpop.f32.mrf.mxu1 }
 0x1b4   :  { %v297_v11 = vmul.f32 0.17677669, %v264_v10 }
 0x1b6   :  { %v306_v12 = vsel %vm302_vm3, %v297_v11, -inf }
 0x1b7   :  { %307 = vmax.xlane.f32.xlu0 %v306_v12 }
 0x1bb   :  { %v267_v13 = vpop.f32.mrf.mxu1 }
 0x1bc   :  { %v298_v14 = vmul.f32 0.17677669, %v267_v13 }
 0x1be   :  { %v309_v15 = vsel %vm302_vm3, %v298_v14, -inf }
 0x1bf   :  { %310 = vmax.xlane.f32.xlu1 %v309_v15 }
 0x1c9   :  { %v287_v16 = vpop.f32.mrf.mxu2 }
 0x1ca   :  { %v299_v17 = vmul.f32 0.17677669, %v287_v16 }
 0x1cc   :  { %v312_v18 = vsel %vm302_vm3, %v299_v17, -inf }
 0x1cd   :  { %313 = vmax.xlane.f32.xlu1 %v312_v18 }
 0x1d1   :  { %v290_v19 = vpop.f32.mrf.mxu2 }
 0x1d2   :  { %v300_v20 = vmul.f32 0.17677669, %v290_v19 }
 0x1d4   :  { %v315_v21 = vsel %vm302_vm3, %v300_v20, -inf }
 0x1d5   :  { %316 = vmax.xlane.f32.xlu2 %v315_v21  ;;  %v461_v21 = vld [vmem:[%s939_s5 + $0xf0] sm:$0xff] }
 0x1d6   :  { %471 = vmatpush.msra.mxu1 %v461_v21 }
 0x1d9   :  { %v293_v22 = vpop.f32.mrf.mxu2 }
 0x1da   :  { %v301_v23 = vmul.f32 0.17677669, %v293_v22  ;;  %v460_v22 = vld [vmem:[%s939_s5 + $0xe0] sm:$0xff] }
 0x1db   :  { %472 = vmatpush.msra.mxu1 %v460_v22 }
 0x1dc   :  { %v318_v24 = vsel %vm302_vm3, %v301_v23, -inf }
 0x1dd   :  { %319 = vmax.xlane.f32.xlu2 %v318_v24 }
 0x222   :  { %v305_v25 = vpop.xlane.xlu0 %304 }
 0x223   :  { %v321_v26 = vsub.f32 %v296_v8, %v305_v25 }
 0x225   :  { %v327_v27 = vmul.f32 1.442695, %v321_v26 }
 0x227   :  { %605 = vpow2.f32 %v327_v27 }
 0x22a   :  { %v308_v28 = vpop.xlane.xlu0 %307 }
 0x22b   :  { %v322_v29 = vsub.f32 %v297_v11, %v308_v28 }
 0x22d   :  { %v606_v30 = vpop.eup %605  ;;  %v329_v31 = vmul.f32 1.442695, %v322_v29 }
 0x22e   :  { %v339_v32 = vsel %vm302_vm3, %v606_v30, 0.0 }
 0x22f   :  { %607 = vpow2.f32 %v329_v31  ;;  %340 = vadd.xlane.f32.xlu0 %v339_v32 }
 0x232   :  { %v311_v33 = vpop.xlane.xlu1 %310 }
 0x233   :  { %v323_v34 = vsub.f32 %v298_v14, %v311_v33 }
 0x235   :  { %v608_v35 = vpop.eup %607  ;;  %v331_v36 = vmul.f32 1.442695, %v323_v34 }
 0x236   :  { %v342_v37 = vsel %vm302_vm3, %v608_v35, 0.0 }
 0x237   :  { %609 = vpow2.f32 %v331_v36  ;;  %343 = vadd.xlane.f32.xlu1 %v342_v37 }
 0x23d   :  { %v610_v38 = vpop.eup %609 }
 0x23e   :  { %v345_v39 = vsel %vm302_vm3, %v610_v38, 0.0 }
 0x23f   :  { %346 = vadd.xlane.f32.xlu2 %v345_v39 }
 0x240   :  { %v314_v40 = vpop.xlane.xlu1 %313 }
 0x241   :  { %v324_v41 = vsub.f32 %v299_v17, %v314_v40 }
 0x243   :  { %v333_v42 = vmul.f32 1.442695, %v324_v41 }
 0x245   :  { %611 = vpow2.f32 %v333_v42  ;;  %v459_v42 = vld [vmem:[%s939_s5 + $0xd0] sm:$0xff] }
 0x246   :  { %473 = vmatpush.msra.mxu1 %v459_v42 }
 0x248   :  { %v317_v43 = vpop.xlane.xlu2 %316 }
 0x249   :  { %v325_v44 = vsub.f32 %v300_v20, %v317_v43  ;;  %v458_v43 = vld [vmem:[%s939_s5 + $0xc0] sm:$0xff] }
 0x24a   :  { %474 = vmatpush.msra.mxu1 %v458_v43 }
 0x24b   :  { %v612_v45 = vpop.eup %611  ;;  %v335_v46 = vmul.f32 1.442695, %v325_v44  ;;  %v457_v44 = vld [vmem:[%s939_s5 + $0xb0] sm:$0xff] }
 0x24c   :  { %v348_v47 = vsel %vm302_vm3, %v612_v45, 0.0  ;;  %475 = vmatpush.msra.mxu1 %v457_v44 }
 0x24d   :  { %613 = vpow2.f32 %v335_v46  ;;  %349 = vadd.xlane.f32.xlu0 %v348_v47  ;;  %v455_v46 = vld [vmem:[%s939_s5 + $0x90] sm:$0xff]  ;;  %v454_v47 = vld [vmem:[%s939_s5 + $0x80] sm:$0xff] }
 0x250   :  { %v320_v48 = vpop.xlane.xlu2 %319 }
 0x251   :  { %v326_v49 = vsub.f32 %v301_v23, %v320_v48  ;;  %v453_v48 = vld [vmem:[%s939_s5 + $0x70] sm:$0xff] }
 0x253   :  { %v614_v50 = vpop.eup %613  ;;  %v337_v51 = vmul.f32 1.442695, %v326_v49  ;;  %v452_v49 = vld [vmem:[%s939_s5 + $0x60] sm:$0xff] }
 0x254   :  { %v351_v52 = vsel %vm302_vm3, %v614_v50, 0.0 }
 0x255   :  { %615 = vpow2.f32 %v337_v51  ;;  %352 = vadd.xlane.f32.xlu1 %v351_v52  ;;  %v450_v51 = vld [vmem:[%s939_s5 + $0x40] sm:$0xff]  ;;  %v449_v52 = vld [vmem:[%s939_s5 + $0x30] sm:$0xff] }
 0x25b   :  { %v616_v53 = vpop.eup %615 }
 0x25c   :  { %v354_v54 = vsel %vm302_vm3, %v616_v53, 0.0 }
 0x25d   :  { %355 = vadd.xlane.f32.xlu2 %v354_v54  ;;  %v447_v54 = vld [vmem:[%s939_s5 + $0x10] sm:$0xff] }
 0x2a2   :  { %v341_v55 = vpop.xlane.xlu0 %340 }
 0x2aa   :  { %v344_v56 = vpop.xlane.xlu1 %343 }
 0x2ab   :  { %617 = vrcp.f32 %v344_v56  ;;  %v491_v56 = vld [vmem:[%s936_s2] sm:$0x3] }
 0x2ac   :  { %619 = vrcp.f32 %v341_v55  ;;  %v446_v55 = vld [vmem:[%s939_s5] sm:$0xff] }
 0x2ad   :  { %621 = vrcp.f32 %v657_v57  ;;  %v520_v57 = vld [vmem:[%s939_s5 + $0xf8] sm:$0xff] }
 0x2ae   :  { %524 = vmatpush.msra.mxu2 %v520_v57 }
 0x2b1   :  { %v618_v58 = vpop.eup %617 }
 0x2b2   :  { %v347_v59 = vpop.xlane.xlu2 %346  ;;  %v620_v60 = vpop.eup %619  ;;  %v364_v61 = vmul.f32 %v618_v58, %v608_v35  ;;  %v658_v58 = vmov 1  }
 0x2b3   :  { %623 = vrcp.f32 %v347_v59  ;;  %v622_v62 = vpop.eup %621  ;;  %v363_v63 = vmul.f32 %v620_v60, %v606_v30  ;;  %601 = vset.pattern.permute.xlu1 %v658_v58  ;;  %v659_v59 = vmov 0   ;;  %v519_v60 = vld [vmem:[%s939_s5 + $0xe8] sm:$0xff] }
 0x2b4   :  { %v370_v0 = vsel %vm302_vm3, %v364_v61, 0.0  ;;  %v392_v1 = vmul.f32 24.0, %v622_v62  ;;  %vm396_vm4 = vweird.f32 %v622_v62  ;;  %600 = vset.pattern.permute.xlu0 %v659_v59  ;;  %500 = vperm.xlu1 %601, %v491_v56   ;;  %v518_v61 = vld [vmem:[%s939_s5 + $0xd8] sm:$0xff] }
 0x2b5   :  { %v369_v3 = vsel %vm302_vm3, %v363_v63, 0.0  ;;  %494 = vperm.xlu0 %600, %v491_v56   ;;  %525 = vmatpush.msra.mxu2 %v519_v60  ;;  %v516_v63 = vld [vmem:[%s939_s5 + $0xb8] sm:$0xff] }
 0x2b6   :  { %v371_v5 = vadd.f32 %v370_v0, %v369_v3  ;;  %v393_v7 = vsub.f32 1.0, %v392_v1  ;;  %v515_v0 = vld [vmem:[%s939_s5 + $0xa8] sm:$0xff]  ;;  %v514_v1 = vld [vmem:[%s939_s5 + $0x98] sm:$0xff] }
 0x2b7   :  { %526 = vmatpush.msra.mxu2 %v518_v61  ;;  %v512_v3 = vld [vmem:[%s939_s5 + $0x78] sm:$0xff] }
 0x2b8   :  { %v394_v10 = vmul.f32 %v622_v62, %v393_v7 }
 0x2b9   :  { %v624_v2 = vpop.eup %623 }
 0x2ba   :  { %v365_v4 = vmul.f32 %v624_v2, %v610_v38  ;;  %v395_v13 = vadd.f32 %v622_v62, %v394_v10  ;;  %v513_v2 = vld [vmem:[%s939_s5 + $0x88] sm:$0xff] }
 0x2bc   :  { %v372_v6 = vsel %vm302_vm3, %v365_v4, 0.0  ;;  %v397_v18 = vsel %vm396_vm4, %v622_v62, %v395_v13  ;;  %v517_v62 = vld [vmem:[%s939_s5 + $0xc8] sm:$0xff]  ;;  %v506_v13 = vld [vmem:[%s939_s5 + $0x18] sm:$0xff] }
 0x2bd   :  { %v373_v8 = vadd.f32 %v372_v6, %v371_v5  ;;  %527 = vmatpush.msra.mxu2 %v517_v62  ;;  %602 = vset.pattern.permute.xlu0 %v658_v58  ;;  %v511_v4 = vld [vmem:[%s939_s5 + $0x68] sm:$0xff]  ;;  %v510_v5 = vld [vmem:[%s939_s5 + $0x58] sm:$0xff] }
 0x2be   :  { %v509_v6 = vld [vmem:[%s939_s5 + $0x48] sm:$0xff] }
 0x2bf   :  { %v374_v9 = vrot.slane %v373_v8, 4  ;;  %528 = vmatpush.msra.mxu2 %v516_v63 }
 0x2c0   :  { %v350_v16 = vpop.xlane.xlu0 %349 }
 0x2c1   :  { %v375_v11 = vadd.f32 %v374_v9, %v373_v8  ;;  %529 = vmatpush.msra.mxu2 %v515_v0 }
 0x2c3   :  { %v376_v12 = vrot.slane %v375_v11, 2  ;;  %530 = vmatpush.msra.mxu2 %v514_v1 }
 0x2c5   :  { %v377_v14 = vadd.f32 %v376_v12, %v375_v11  ;;  %531 = vmatpush.msra.mxu2 %v513_v2  ;;  %v508_v11 = vld [vmem:[%s939_s5 + $0x38] sm:$0xff]  ;;  %v507_v12 = vld [vmem:[%s939_s5 + $0x28] sm:$0xff] }
 0x2c7   :  { %v378_v15 = vrot.slane %v377_v14, 1  ;;  %532 = vmatpush.msra.mxu2 %v512_v3 }
 0x2c8   :  { %v353_v17 = vpop.xlane.xlu1 %352 }
 0x2c9   :  { %625 = vrcp.f32 %v353_v17  ;;  %v379_v19 = vadd.f32 %v378_v15, %v377_v14  ;;  %533 = vmatpush.msra.mxu2 %v511_v4  ;;  %v505_v14 = vld [vmem:[%s939_s5 + $0x8] sm:$0xff]  ;;  %v603_v15 = vld [vmem:[%s940_s6 + $0x3] ss:$0 sm:$0xff] }
 0x2ca   :  { %627 = vrcp.f32 %v350_v16  ;;  %v498_v16 = vld [vmem:[%s935_s1] sm:$0x3] }
 0x2cb   :  { %v398_v20 = vmul.f32 %v397_v18, %v379_v19  ;;  %534 = vmatpush.msra.mxu2 %v510_v5 }
 0x2cd   :  { %586 = vmatmul.msk.f32.vlgmr.msra.gmra.mxu3 %vm302_vm3, %v398_v20  ;;  %535 = vmatpush.msra.mxu2 %v509_v6 }
 0x2cf   :  { %v626_v23 = vpop.eup %625  ;;  %536 = vmatpush.msra.mxu2 %v508_v11 }
 0x2d0   :  { %v356_v24 = vpop.xlane.xlu2 %355  ;;  %v628_v25 = vpop.eup %627  ;;  %v367_v26 = vmul.f32 %v626_v23, %v614_v50  ;;  %v451_v50 = vld [vmem:[%s939_s5 + $0x50] sm:$0xff] }
 0x2d1   :  { %629 = vrcp.f32 %v356_v24  ;;  %v366_v27 = vmul.f32 %v628_v25, %v612_v45  ;;  %v456_v45 = vld [vmem:[%s939_s5 + $0xa0] sm:$0xff]  ;;  %537 = vmatpush.msra.mxu2 %v507_v12 }
 0x2d2   :  { %v381_v28 = vsel %vm302_vm3, %v367_v26, 0.0  ;;  %476 = vmatpush.msra.mxu1 %v456_v45  ;;  %v604_v24 = vld [vmem:[%s940_s6 + $0x4] ss:$0 sm:$0xff] }
 0x2d3   :  { %v380_v30 = vsel %vm302_vm3, %v366_v27, 0.0  ;;  %538 = vmatpush.msra.mxu2 %v506_v13 }
 0x2d4   :  { %v382_v32 = vadd.f32 %v381_v28, %v380_v30  ;;  %477 = vmatpush.msra.mxu1 %v455_v46 }
 0x2d5   :  { %539 = vmatpush.msra.mxu2 %v505_v14 }
 0x2d6   :  { %478 = vmatpush.msra.mxu1 %v454_v47 }
 0x2d7   :  { %v630_v29 = vpop.eup %629 }
 0x2d8   :  { %v368_v31 = vmul.f32 %v630_v29, %v616_v53  ;;  %479 = vmatpush.msra.mxu1 %v453_v48  ;;  %v448_v53 = vld [vmem:[%s939_s5 + $0x20] sm:$0xff]  ;;  %s660_s5 = smov [#allocation2]  }
 0x2d9   :  { %s550_s20 = sshll.u32 %s660_s5, 4  ;;  %s551_s20 = int_to_ptr.vmem [resolvable:$true] %s550_s20 }
 0x2da   :  { %v383_v33 = vsel %vm302_vm3, %v368_v31, 0.0  ;;  %480 = vmatpush.msra.mxu1 %v452_v49 }
 0x2db   :  { %v384_v34 = vadd.f32 %v383_v33, %v382_v32 }
 0x2dc   :  { %481 = vmatpush.msra.mxu1 %v451_v50 }
 0x2dd   :  { %v385_v35 = vrot.slane %v384_v34, 4 }
 0x2de   :  { %482 = vmatpush.msra.mxu1 %v450_v51 }
 0x2df   :  { %v386_v36 = vadd.f32 %v385_v35, %v384_v34 }
 0x2e0   :  { %483 = vmatpush.msra.mxu1 %v449_v52 }
 0x2e1   :  { %v387_v37 = vrot.slane %v386_v36, 2 }
 0x2e2   :  { %484 = vmatpush.msra.mxu1 %v448_v53 }
 0x2e3   :  { %v388_v38 = vadd.f32 %v387_v37, %v386_v36 }
 0x2e4   :  { %485 = vmatpush.msra.mxu1 %v447_v54 }
 0x2e5   :  { %v389_v39 = vrot.slane %v388_v38, 1 }
 0x2e6   :  { %486 = vmatpush.msra.mxu1 %v446_v55 }
 0x2e7   :  { %v390_v40 = vadd.f32 %v389_v39, %v388_v38 }
 0x2e9   :  { %v399_v41 = vmul.f32 %v397_v18, %v390_v40 }
 0x2eb   :  { %587 = vmatmul.msk.f32.vlgmr.msra.gmra.mxu0 %vm302_vm3, %v399_v41 }
 0x326   :  { %v501_v17 = vpop.permute.xlu1 %500 }
 0x327   :  { %v495_v19 = vpop.permute.xlu0 %494  ;;  %v503_v21 = vmul.f32 %v501_v17, %v498_v16 }
 0x350   :  { %v420_v9 = vpop.f32.mrf.mxu3 }
 0x368   :  { %v443_v7 = vpop.f32.mrf.mxu0 }
 0x369   :  { %v467_v8 = vrot.slane %v443_v7, 7 }
 0x36b   :  { %v469_v10 = vsel %vm468_vm5, %v467_v8, %v420_v9 }
 0x36c   :  { %487 = vmatmul.f32.vlgmr.msra.gmra.mxu1 %v469_v10 }
 0x3e9   :  { %v488_v18 = vpop.f32.mrf.mxu1 }
 0x3ea   :  { %v489_v20 = vadd.f32 %v603_v15, %v488_v18 }
 0x3ec   :  { %v497_v22 = vmul.f32 %v495_v19, %v489_v20 }
 0x3ee   :  { %v504_v23 = vadd.f32 %v503_v21, %v497_v22 }
 0x3f0   :  { %540 = vmatmul.f32.vlgmr.msra.gmra.mxu2 %v504_v23 }
 0x473   :  { %v541_v25 = vpop.f32.mrf.mxu2 }
 0x474   :  { %v542_v26 = vadd.f32 %v604_v24, %v541_v25 }
 0x476   :  { %544 = vst [vmem:[#allocation2] sm:$0x3] %v542_v26 }
 0x477   :  { %555 = dma.vmem_to_hbm [thread:$0]  %s551_s20, 32, %s553_s22, [#allocation3]  }
 0x478   :  { %655 = dma.done.wait [#allocation3], 32  }
 0x479   :  { %656 = vsyncadd [#allocation3], 4294967264 }
 0x47a   :  { %560 = vsyncpa [#allocation3], 1 }

</bundles_post_ra>
